<compile_context>
chip_gen: v7x
topology: tpu7x:2x2x1
jax: 0.10.0
libtpu: 0.0.40
codegen_flags: <defaults>
</compile_context>

<pallas_src>
import numpy as np
import jax
import jax.numpy as jnp
from jax.experimental import pallas as pl
from jax.experimental.pallas import tpu as pltpu


def encoder_image_kernel(x_ref, w_ref, b_ref, o_ref):
    # x_ref: (TB, D_in)  w_ref: (D_in, E)  b_ref: (1, E)  o_ref: (TB, E)
    x = x_ref[...].astype(jnp.float32)

    # l2norm over feature dim (dim=1).  Matches torch X / sqrt(sum(X^2)) exactly in the
    # zero-row limit (rsqrt(0)=inf -> 0*inf=NaN, same as torch's 0/0); no eps added to
    # preserve parity with the reference module.
    inv1 = jax.lax.rsqrt(jnp.sum(x * x, axis=1, keepdims=True))
    xn = x * inv1

    # fc: Linear(cnn_dim, embed_size) on the MXU.  Cast activations to the weight dtype
    # (bf16 weights -> native bf16 MXU op) with f32 accumulation.
    y = jnp.dot(xn.astype(w_ref.dtype), w_ref[...],
                preferred_element_type=jnp.float32) + b_ref[...].astype(jnp.float32)

    # second l2norm (no_imgnorm=False)
    inv2 = jax.lax.rsqrt(jnp.sum(y * y, axis=1, keepdims=True))
    o_ref[...] = (y * inv2).astype(o_ref.dtype)


def _round_up(x, m):
    return ((x + m - 1) // m) * m


def _vmem_capacity_bytes():
    try:
        return int(pltpu.get_tpu_info().vmem_capacity_bytes)
    except Exception:
        return 64 << 20  # conservative (v7x per-TC) fallback


def _default_block_b():
    # 128 MiB-VMEM parts (v5e/v6e) can afford bigger, HBM-roofline-friendly tiles;
    # keep 512 on v7x's 64 MiB per-TC VMEM.
    return 1024 if _vmem_capacity_bytes() >= (96 << 20) else 512


def encoder_image(features, fc_weight_t, fc_bias, *, block_b=None, out_dtype=None,
                  vmem_limit_bytes=None):
    """features: (B, D_in).  fc_weight_t: (D_in, E) -- pre-transposed once at init
    (torch stores (E, D_in)).  fc_bias: (E,)."""
    B, D_in = features.shape
    d_in_w, E = fc_weight_t.shape
    assert d_in_w == D_in, "fc_weight_t must be (D_in, E)"
    b = fc_bias.reshape(1, E)

    if block_b is None:
        block_b = _default_block_b()
    if out_dtype is None:
        out_dtype = features.dtype  # bf16 features -> bf16 output (halves out DMA)

    # Batch tile: aim for >=2 balanced tiles (megacore sharding on v7x), multiple of 8
    # for the (8,128) rule, capped at block_b.  Tiny batches fall back to a single
    # full-extent tile (always legal since it equals the full array dim).
    half = _round_up(pl.cdiv(B, 2), 8)
    tb = min(block_b, half)
    if tb >= B:
        tb = B
    grid = (pl.cdiv(B, tb),)

    x_bpe = features.dtype.itemsize
    w_bpe = fc_weight_t.dtype.itemsize
    o_bpe = jnp.dtype(out_dtype).itemsize

    cost = pl.CostEstimate(
        flops=2 * B * D_in * E,
        transcendentals=2 * B,
        bytes_accessed=B * D_in * x_bpe + D_in * E * w_bpe + E * w_bpe + B * E * o_bpe,
    )

    if vmem_limit_bytes is None:
        # x tile x2 buffers + weight x1 (Buffered(1)) + bias + out tile x2, headroom x2,
        # capped at ~75% of this chip's VMEM.
        est = (2 * tb * D_in * x_bpe
               + D_in * E * w_bpe
               + E * w_bpe
               + 2 * tb * E * o_bpe)
        cap = int(0.75 * _vmem_capacity_bytes())
        vmem_limit_bytes = int(min(max(2 * est, 16 << 20), cap))

    return pl.pallas_call(
        encoder_image_kernel,
        out_shape=jax.ShapeDtypeStruct((B, E), out_dtype),
        grid_spec=pltpu.PrefetchScalarGridSpec(
            num_scalar_prefetch=0,
            grid=grid,
            in_specs=[
                # batch tile, pipelined (default double-buffering; sweep Buffered(3)
                # on v7x if profiling shows exposed DMA at tile boundaries)
                pl.BlockSpec((tb, D_in), lambda i: (i, 0)),
                # weight & bias: constant index -> single buffer, stays resident
                pl.BlockSpec((D_in, E), lambda i: (0, 0), pipeline_mode=pl.Buffered(1)),
                pl.BlockSpec((1, E), lambda i: (0, 0), pipeline_mode=pl.Buffered(1)),
            ],
            out_specs=pl.BlockSpec((tb, E), lambda i: (i, 0)),
        ),
        compiler_params=pltpu.CompilerParams(
            dimension_semantics=("parallel",),   # independent batch tiles -> megacore
            vmem_limit_bytes=vmem_limit_bytes,
        ),
        cost_estimate=cost,
    )(features, fc_weight_t, b)


def init_fc_params(key, in_features, out_features, dtype=jnp.float32):
    """Xavier-uniform init exactly as EncoderImage.init_weights: U(-r, r),
    r=sqrt(6)/sqrt(in+out); bias=0.  Weight is produced directly in the (D_in, E)
    layout the kernel consumes (same distribution as torch's (E, D_in) draw).
    Pass dtype=jnp.bfloat16 for bf16 weights (native MXU on v5e, halved weight DMA)."""
    r = np.sqrt(6.0) / np.sqrt(in_features + out_features)
    w_t = jax.random.uniform(key, (in_features, out_features),
                             minval=-r, maxval=r, dtype=jnp.float32).astype(dtype)
    bias = jnp.zeros((out_features,), dtype=jnp.float32)
    return w_t, bias


def _reference(features, fc_weight_t, fc_bias):
    x = features.astype(jnp.float32)
    xn = x / jnp.sqrt(jnp.sum(x ** 2, axis=1, keepdims=True))
    y = xn @ fc_weight_t.astype(jnp.float32) + fc_bias
    return y / jnp.sqrt(jnp.sum(y ** 2, axis=1, keepdims=True))


if __name__ == "__main__":
    # Small, TPU-tile-friendly shapes: batch=32, cnn feature dim=256, embed_size=128.
    # (ResNet152 production sizes would be D_in=2048, E~1024.)
    B, D_in, E = 32, 256, 128
    key = jax.random.PRNGKey(0)
    k_feat, k_w = jax.random.split(key)

    # Synthetic CNN backbone output (stands in for ResNet152 pooled features).
    features = jax.random.normal(k_feat, (B, D_in), dtype=jnp.float32)
    fc_w_t, fc_b = init_fc_params(k_w, D_in, E)   # f32 here; bf16 also supported

    # Main run: tb collapses to 16 -> grid=(2,), exercising the pipelined multi-tile path.
    out = encoder_image(features, fc_w_t, fc_b)
    out = jax.block_until_ready(out)

    ref = _reference(features, fc_w_t, fc_b)
    np.testing.assert_allclose(np.asarray(out), np.asarray(ref), rtol=1e-4, atol=1e-5)

    # Ragged-batch check: B not a multiple of the tile -> partial last output block
    # must be masked correctly on store.
    B2 = 20
    feats2 = jax.random.normal(jax.random.PRNGKey(1), (B2, D_in), dtype=jnp.float32)
    out2 = jax.block_until_ready(encoder_image(feats2, fc_w_t, fc_b, block_b=16))
    ref2 = _reference(feats2, fc_w_t, fc_b)
    np.testing.assert_allclose(np.asarray(out2), np.asarray(ref2), rtol=1e-4, atol=1e-5)

    print("KERNEL_OK")
</pallas_src>

<mosaic_0001>
module attributes {stable_mosaic.version = 11 : i64} {
  func.func @encoder_image_kernel(%arg0: i32, %arg1: memref<16x256xf32, #tpu.memory_space<vmem>>, %arg2: memref<256x128xf32, #tpu.memory_space<vmem>>, %arg3: memref<1x128xf32, #tpu.memory_space<vmem>>, %arg4: memref<16x128xf32, #tpu.memory_space<vmem>>) attributes {dimension_semantics = [#tpu.dimension_semantics<parallel>], iteration_bounds = array<i64: 2>, scalar_prefetch = 0 : i64, scratch_operands = 0 : i64, tpu.core_type = #tpu.core_type<tc>, window_params = [{transform_indices = @transform_0, window_bounds = array<i64: 16, 256>}, {pipeline_mode = #tpu.pipeline_mode<synchronous>, transform_indices = @transform_1, window_bounds = array<i64: 256, 128>}, {pipeline_mode = #tpu.pipeline_mode<synchronous>, transform_indices = @transform_2, window_bounds = array<i64: 1, 128>}, {transform_indices = @transform_3, window_bounds = array<i64: 16, 128>}]} {
    %c0 = arith.constant 0 : index
    %c0_0 = arith.constant 0 : index
    %0 = vector.load %arg1[%c0, %c0_0] : memref<16x256xf32, #tpu.memory_space<vmem>>, vector<16x256xf32>
    %1 = arith.mulf %0, %0 : vector<16x256xf32>
    %cst = arith.constant dense<0.000000e+00> : vector<16xf32>
    %2 = vector.multi_reduction <add>, %1, %cst [1] : vector<16x256xf32> to vector<16xf32>
    %3 = vector.shape_cast %2 : vector<16xf32> to vector<16x1xf32>
    %4 = math.rsqrt %3 : vector<16x1xf32>
    %5 = vector.broadcast %4 : vector<16x1xf32> to vector<16x256xf32>
    %6 = arith.mulf %0, %5 : vector<16x256xf32>
    %c0_1 = arith.constant 0 : index
    %c0_2 = arith.constant 0 : index
    %7 = vector.load %arg2[%c0_1, %c0_2] : memref<256x128xf32, #tpu.memory_space<vmem>>, vector<256x128xf32>
    %cst_3 = arith.constant dense<0.000000e+00> : vector<16x128xf32>
    %8 = tpu.matmul %6, %7, %cst_3 {dimension_numbers = #tpu.dot_dimension_numbers<[1], [0], [0], [1], [0, 0, 1, 1], [], []>} : vector<16x256xf32>, vector<256x128xf32>, vector<16x128xf32> -> vector<16x128xf32>
    %c0_4 = arith.constant 0 : index
    %c0_5 = arith.constant 0 : index
    %9 = vector.load %arg3[%c0_4, %c0_5] : memref<1x128xf32, #tpu.memory_space<vmem>>, vector<1x128xf32>
    %10 = vector.broadcast %9 : vector<1x128xf32> to vector<16x128xf32>
    %11 = arith.addf %8, %10 : vector<16x128xf32>
    %12 = arith.mulf %11, %11 : vector<16x128xf32>
    %cst_6 = arith.constant dense<0.000000e+00> : vector<16xf32>
    %13 = vector.multi_reduction <add>, %12, %cst_6 [1] : vector<16x128xf32> to vector<16xf32>
    %14 = vector.shape_cast %13 : vector<16xf32> to vector<16x1xf32>
    %15 = math.rsqrt %14 : vector<16x1xf32>
    %16 = vector.broadcast %15 : vector<16x1xf32> to vector<16x128xf32>
    %17 = arith.mulf %11, %16 : vector<16x128xf32>
    %c0_7 = arith.constant 0 : index
    %c0_8 = arith.constant 0 : index
    %18 = vector.load %arg4[%c0_7, %c0_8] : memref<16x128xf32, #tpu.memory_space<vmem>>, vector<16x128xf32>
    tpu.vector_store %arg4[%c0_7, %c0_8], %17 {strides = array<i32>} : memref<16x128xf32, #tpu.memory_space<vmem>>, vector<16x128xf32>,
    return
  }
  func.func @transform_0(%arg0: i32) -> (i32, i32) {
    %c0_i32 = arith.constant 0 : i32
    %c0_i32_0 = arith.constant 0 : i32
    return %arg0, %c0_i32 : i32, i32
  }
  func.func @transform_1(%arg0: i32) -> (i32, i32) {
    %c0_i32 = arith.constant 0 : i32
    %c0_i32_0 = arith.constant 0 : i32
    %c0_i32_1 = arith.constant 0 : i32
    return %c0_i32, %c0_i32_0 : i32, i32
  }
  func.func @transform_2(%arg0: i32) -> (i32, i32) {
    %c0_i32 = arith.constant 0 : i32
    %c0_i32_0 = arith.constant 0 : i32
    %c0_i32_1 = arith.constant 0 : i32
    return %c0_i32, %c0_i32_0 : i32, i32
  }
  func.func @transform_3(%arg0: i32) -> (i32, i32) {
    %c0_i32 = arith.constant 0 : i32
    %c0_i32_0 = arith.constant 0 : i32
    return %arg0, %c0_i32 : i32, i32
  }
}

</mosaic_0001>

<bundles_post_ra>
// kernel: tpu_custom_call.1
= control target key start
LH: loop header
LB: loop body
LE: loop exit
PB: predicated region body
PF: predicated region fallthrough
CT: control target
= control target key end

     0   :  { %8 = vsyncpa [#allocation3], 0  ;;  %s1012_s0 = inlined_call_operand.hbm [shape: f32[32,256], index: 0, kind: input, shape index: {}]   ;;  %s1013_s1 = inlined_call_operand.hbm [shape: f32[256,128], index: 1, kind: input, shape index: {}]   ;;  %s1014_s2 = inlined_call_operand.vmem [shape: f32[1,128], index: 2, kind: input, shape index: {}]   ;;  %s1015_s3 = inlined_call_operand.hbm [shape: f32[32,128], index: 3, kind: output, shape index: {}]  }
   0x1   :  { %10 = vsyncpa [#allocation3 + $0x1], 0 }
   0x2   :  { %11 = vsyncpa [#allocation6], 0 }
   0x3   :  { %12 = vsyncpa [#allocation4], 0 }
   0x4   :  { %14 = vsyncpa [#allocation4 + $0x1], 0  ;;  %s787_s12 = smov 0   ;;  %s789_s13 = smov 0  }
   0x5   :  { %s791_s14 = smov 0   ;;  %s793_s15 = smov 0  }
   0x6 LB: > { %s808_s16 = sadd.s32 4294967295, %s756_s15   ;;  %s450_s17 = sadd.s32 4294967294, %s756_s15   ;;  %s756_s15 = sphi %s793_s15, %s1035_s15   ;;  %s752_s14 = sphi %s791_s14, %s1034_s14   ;;  %s748_s13 = sphi %s789_s13, %s1033_s13   ;;  %s744_s12 = sphi %s787_s12, %s1032_s12  }
   0x7   : > { %p40_p0 = scmp.ne.s32.totalorder %s748_s13, %s744_s12  ;;  %p1016_p1 = scmp.eq.s32.totalorder %s808_s16, 0 }
   0x8   : > { %p112_p3 = scmp.eq.s32.totalorder %s450_s17, 1  ;;  %p451_p5 = scmp.ge.s32.totalorder %s756_s15, 1 }
   0x9   : > { %p817_p4 = por %p1016_p1, %p40_p0  ;;  %p119_p7 = scmp.lt.s32.totalorder %s756_s15, 3 }
   0xa   : > { %p822_p6 = por %p112_p3, %p40_p0  ;;  %s758_s21 = smov [#allocation5]  }
   0xb   : > { %s1019_s18 = scalar_select %p817_p4, 1, 0 }
   0xc   : > { %s1020_s19 = scalar_select %p822_p6, 1, 0 }
   0xd   : > { %p827_p8 = pnand %p451_p5, %p119_p7  ;;  %s131_s22 = sshll.u32 %s758_s21, 4  ;;  %s831_s22 = int_to_ptr.vmem [resolvable:$true] %s131_s22 }
   0xe   : > { %s843_s24 = sadd.s32 1, %s756_s15   ;;  %s27_s25 = sadd.s32 1, %s752_s14 }
   0xf   : > { %s1021_s20 = scalar_select %p827_p8, 1, 0 }
  0x10   : > { %p565_p9 = pneg %p827_p8  ;;  %s24_s26 = ssub.s32 %s756_s15, %s843_s24 }
  0x11   : > { %s628_s29 = scalar_lea.hbm %s1013_s1, 4096 }
  0x12   : > { %p838_p11 = pnand %p565_p9, %p1016_p1  ;;  %p629_p12 = scmp.ne.s32.totalorder %s1013_s1, %s628_s29 }
  0x13   : > { %p635_p5 = scmp.lt.u32.totalorder %s628_s29, %s1013_s1 }
  0x14   : > { %p630_p13 = pneg %p838_p11 }
  0x16   : > { %p631_p0 = pnand %p630_p13, %p629_p12 }
  0x18   : > { %p632_p3 = pneg %p631_p0 }
  0x1a   : > { %p637_p7 = pnand %p635_p5, %p632_p3 }
  0x1c   : > { %640 = shalt.err (!%p637_p7)
}
  0x1d   : > { %s641_s7 = scalar_lea.vmem %s831_s22, 4096  ;;  %p649_p2 = scmp.lt.s32.totalorder %s831_s22, %s831_s22 }
  0x1e   : > { %p642_p9 = scmp.ne.s32.totalorder %s831_s22, %s641_s7  ;;  %p650_p6 = scmp.lt.s32.totalorder %s641_s7, %s641_s7 }
  0x20   : > { %p644_p10 = pnand %p642_p9, %p630_p13  ;;  %p651_p4 = por %p650_p6, %p649_p2 }
  0x22   : > { %p645_p1 = pneg %p644_p10 }
  0x24   : > { %p652_p8 = pnand %p651_p4, %p645_p1 }
  0x26   : > { %655 = shalt.err (!%p652_p8)
}
  0x27   : > { %s759_s8 = smov 128   ;;  %s760_s9 = smov 8  }
  0x28   : > { %568 = dma.hbm_to_vmem [thread:$0]  (!%p838_p11), %s1013_s1, 4096, %s831_s22, [#allocation6], %s759_s8, %s759_s8, %s760_s9  }
  0x29   : > { %p25_p2 = scmp.eq.s32.totalorder %s24_s26, 0  ;;  %p34_p1 = scmp.ne.s32.totalorder %s752_s14, %s748_s13 }
  0x2a   : > { %p35_p4 = scmp.eq.s32.totalorder %s756_s15, 0  ;;  %p578_p6 = scmp.lt.s32.totalorder %s756_s15, 2 }
  0x2b   : > { %s874_s17 = scalar_select %p25_p2, %s752_s14, %s27_s25  }
  0x2c   : > { %p36_p8 = por %p35_p4, %p34_p1  ;;  %p1023_p10 = scmp.eq.s32.totalorder %s808_s16, 1 }
  0x2d   : > { %s148_s27 = sand.u32 1, %s752_s14   ;;  %s469_s28 = sshll.u32 %s756_s15, 9 }
  0x2e   : > { %p878_p12 = por %p1023_p10, %p34_p1  ;;  %s454_s29 = sshll.u32 %s148_s27, 5 }
  0x2f   : > { %s887_s4 = scalar_lea.hbm %s1012_s0, %s469_s28  ;;  %s152_s22 = scalar_lea.vmem [#allocation2], %s454_s29 }
  0x30   : > { %s160_s25 = sshll.u32 %s152_s22, 4  ;;  %p889_p11 = pnand %p578_p6, %p36_p8  ;;  %s893_s25 = int_to_ptr.vmem [resolvable:$true] %s160_s25 }
  0x31   : > { %s895_s5 = scalar_lea.sflag [#allocation3], %s148_s27  ;;  %s656_s6 = scalar_lea.hbm %s887_s4, 512 }
  0x32   : > { %p657_p13 = scmp.ne.s32.totalorder %s887_s4, %s656_s6  ;;  %p658_p0 = pneg %p889_p11 }
  0x33   : > { %s661_s9 = scalar_lea.hbm %s1012_s0, 1024  ;;  %p662_p7 = scmp.lt.u32.totalorder %s887_s4, %s1012_s0 }
  0x34   : > { %p659_p3 = pnand %p658_p0, %p657_p13  ;;  %p663_p9 = scmp.lt.u32.totalorder %s661_s9, %s656_s6 }
  0x35   : > { %p665_p1 = scmp.lt.u32.totalorder %s656_s6, %s887_s4 }
  0x36   : > { %p660_p5 = pneg %p659_p3  ;;  %p664_p2 = por %p663_p9, %p662_p7 }
  0x38   : > { %p666_p4 = por %p665_p1, %p664_p2 }
  0x3a   : > { %p667_p6 = pnand %p666_p4, %p660_p5 }
  0x3c   : > { %670 = shalt.err (!%p667_p6)
}
  0x3d   : > { %s671_s27 = scalar_lea.vmem %s893_s25, 512  ;;  %s761_s28 = smov [#allocation2]  }
  0x3e   : > { %p672_p8 = scmp.ne.s32.totalorder %s893_s25, %s671_s27  ;;  %s676_s29 = sshll.u32 %s761_s28, 4  ;;  %s677_s29 = int_to_ptr.vmem [resolvable:$false] %s676_s29 }
  0x3f   : > { %s678_s23 = scalar_lea.vmem %s677_s29, 1024  ;;  %p679_p3 = scmp.lt.s32.totalorder %s893_s25, %s677_s29 }
  0x40   : > { %p674_p10 = pnand %p672_p8, %p658_p0  ;;  %p680_p7 = scmp.lt.s32.totalorder %s678_s23, %s671_s27 }
  0x42   : > { %p675_p13 = pneg %p674_p10  ;;  %p681_p9 = por %p680_p7, %p679_p3 }
  0x44   : > { %p682_p2 = pnand %p681_p9, %p675_p13 }
  0x46   : > { %685 = shalt.err (!%p682_p2)
}
  0x47   : > { %s762_s30 = smov 256   ;;  %s763_s22 = smov 16  }
  0x48   : > { %572 = dma.hbm_to_vmem [thread:$0]  (!%p889_p11), %s887_s4, 512, %s893_s25, %s895_s5, %s762_s30, %s762_s30, %s763_s22  }
  0x49   : > { %p1026_p0 = scmp.ne.s32.totalorder %s1021_s20, 0 }
  0x4a   : > { %s926_s6 = sand.u32 (!%p1026_p0), 1, %s748_s13   ;;  %p1027_p5 = scmp.ne.s32.totalorder (!%p1026_p0), %s1019_s18, 0 }
  0x4b   : > { %172 = sbr.rel (%p1026_p0) target bundleno = 641 (0x281), region = 32  ;;  %s459_s7 = sshll.u32 (!%p1026_p0), %s926_s6, 5 }
  0x4c   : > { %s175_s8 = scalar_lea.sflag (!%p1026_p0), [#allocation3], %s926_s6  ;;  %s178_s9 = scalar_lea.vmem (!%p1026_p0), [#allocation2], %s459_s7 }
  0x52   : > { %731 = dma.done.wait (%p1027_p5), %s175_s8, 512  }
  0x53   : > { %733 = vsyncadd (%p1027_p5), %s175_s8, 4294966784  ;;  %p1028_p1 = scmp.eq.s32.totalorder %s808_s16, 0 }
  0x55   : > { %735 = dma.done.wait (%p1028_p1), [#allocation6], 4096   ;;  %p1029_p11 = pmov %p1028_p1 }
  0x56   : > { %v938_v0 = vld [vmem:[%s178_s9] sm:$0xff]  ;;  %v940_v1 = vld [vmem:[%s178_s9 + $0x8] sm:$0xff]  ;;  %v942_v2 = vld [vmem:[%s178_s9 + $0x10] sm:$0xff]  ;;  %s461_s4 = sshll.u32 %s926_s6, 4  ;;  %s470_s25 = sshll.u32 %s808_s16, 8 }
  0x57   : > { %737 = vsyncadd (%p1029_p11), [#allocation6], 4294963200  ;;  %v211_v3 = vmul.f32 %v938_v0, %v938_v0  ;;  %v212_v4 = vmul.f32 %v940_v1, %v940_v1  ;;  %v948_v5 = vld [vmem:[%s178_s9 + $0x18] sm:$0xff]  ;;  %v213_v6 = vmul.f32 %v942_v2, %v942_v2  ;;  %v243_v7 = vld [vmem:[#allocation5 + $0x80] sm:$0xff]  ;;  %s204_s26 = scalar_lea.vmem [#allocation7], %s461_s4  ;;  %s966_s27 = scalar_lea.hbm %s1015_s3, %s470_s25 }
  0x58   : > { %v244_v8 = vld [vmem:[#allocation5 + $0x88] sm:$0xff]  ;;  %v214_v9 = vmul.f32 %v948_v5, %v948_v5  ;;  %v227_v11 = vld [vmem:[#allocation5] sm:$0xff]  ;;  %v245_v13 = vld [vmem:[#allocation5 + $0x90] sm:$0xff]  ;;  %s367_s5 = sshll.u32 %s204_s26, 4  ;;  %s354_s28 = scalar_lea.sflag [#allocation4], %s926_s6  ;;  %s968_s5 = int_to_ptr.vmem [resolvable:$true] %s367_s5 }
  0x59   : > { %v509_v10 = vpack.c.bf16 %v244_v8, %v243_v7  ;;  %v228_v12 = vld [vmem:[#allocation5 + $0x8] sm:$0xff]  ;;  %v215_v14 = vadd.f32 %v212_v4, %v211_v3  ;;  %v246_v16 = vld [vmem:[#allocation5 + $0x98] sm:$0xff]  ;;  %v229_v17 = vld [vmem:[#allocation5 + $0x10] sm:$0xff]  ;;  %s686_s29 = scalar_lea.vmem %s968_s5, 256  ;;  %s764_s16 = smov [#allocation7]  }
  0x5a   : > { %v511_v15 = vpack.c.bf16 %v228_v12, %v227_v11  ;;  %v230_v18 = vld [vmem:[#allocation5 + $0x18] sm:$0xff]  ;;  %v513_v19 = vpack.c.bf16 %v246_v16, %v245_v13  ;;  %v247_v20 = vld [vmem:[#allocation5 + $0xa0] sm:$0xff]  ;;  %v248_v21 = vld [vmem:[#allocation5 + $0xa8] sm:$0xff]  ;;  %v218_v22 = vadd.f32 %v214_v9, %v213_v6  ;;  %p687_p4 = scmp.ne.s32.totalorder %s968_s5, %s686_s29  ;;  %s690_s23 = sshll.u32 %s764_s16, 4  ;;  %s691_s23 = int_to_ptr.vmem [resolvable:$false] %s690_s23 }
  0x5b   : > { %510 = vmatprep.subr.bf16.mxu0 %v509_v10  ;;  %541 = vmatprep.subr.bf16.mxu1 %v509_v10  ;;  %v515_v23 = vpack.c.bf16 %v230_v18, %v229_v17  ;;  %v517_v24 = vpack.c.bf16 %v248_v21, %v247_v20  ;;  %v231_v25 = vld [vmem:[#allocation5 + $0x20] sm:$0xff]  ;;  %v232_v26 = vld [vmem:[#allocation5 + $0x28] sm:$0xff]  ;;  %v249_v27 = vld [vmem:[#allocation5 + $0xb0] sm:$0xff]  ;;  %s692_s30 = scalar_lea.vmem %s691_s23, 512  ;;  %p693_p10 = scmp.lt.s32.totalorder %s968_s5, %s691_s23 }
  0x5c   : > { %216 = vadd.xlane.f32.xlu0 %v215_v14  ;;  %512 = vmatpush3.bf16.msra.mxu0 %v511_v15  ;;  %v250_v28 = vld [vmem:[#allocation5 + $0xb8] sm:$0xff]  ;;  %v519_v29 = vpack.c.bf16 %v232_v26, %v231_v25  ;;  %v233_v31 = vld [vmem:[#allocation5 + $0x30] sm:$0xff]  ;;  %v251_v33 = vld [vmem:[#allocation5 + $0xc0] sm:$0xff]  ;;  %p688_p6 = pnand %p687_p4, %p878_p12  ;;  %p694_p13 = scmp.lt.s32.totalorder %s692_s30, %s686_s29 }
  0x5d   : > { %514 = vmatprep.subr.bf16.mxu0 %v513_v19  ;;  %549 = vmatpush3.bf16.msra.mxu1 %v511_v15  ;;  %v521_v30 = vpack.c.bf16 %v250_v28, %v249_v27  ;;  %v234_v32 = vld [vmem:[#allocation5 + $0x38] sm:$0xff]  ;;  %v252_v34 = vld [vmem:[#allocation5 + $0xc8] sm:$0xff]  ;;  %v235_v37 = vld [vmem:[#allocation5 + $0x40] sm:$0xff] }
  0x5e   : > { %542 = vmatprep.subr.bf16.mxu1 %v513_v19  ;;  %v523_v35 = vpack.c.bf16 %v234_v32, %v233_v31  ;;  %v525_v36 = vpack.c.bf16 %v252_v34, %v251_v33  ;;  %v236_v38 = vld [vmem:[#allocation5 + $0x48] sm:$0xff]  ;;  %v253_v40 = vld [vmem:[#allocation5 + $0xd0] sm:$0xff]  ;;  %v254_v41 = vld [vmem:[#allocation5 + $0xd8] sm:$0xff]  ;;  %p689_p8 = pneg %p688_p6  ;;  %p695_p3 = por %p694_p13, %p693_p10 }
  0x5f   : > { %v527_v39 = vpack.c.bf16 %v236_v38, %v235_v37  ;;  %v529_v42 = vpack.c.bf16 %v254_v41, %v253_v40  ;;  %v237_v43 = vld [vmem:[#allocation5 + $0x50] sm:$0xff]  ;;  %v238_v44 = vld [vmem:[#allocation5 + $0x58] sm:$0xff]  ;;  %v255_v46 = vld [vmem:[#allocation5 + $0xe0] sm:$0xff] }
  0x60   : > { %219 = vadd.xlane.f32.xlu0 %v218_v22  ;;  %516 = vmatpush3.bf16.msra.mxu0 %v515_v23  ;;  %v531_v45 = vpack.c.bf16 %v238_v44, %v237_v43  ;;  %v256_v47 = vld [vmem:[#allocation5 + $0xe8] sm:$0xff]  ;;  %v239_v49 = vld [vmem:[#allocation5 + $0x60] sm:$0xff]  ;;  %v257_v51 = vld [vmem:[#allocation5 + $0xf0] sm:$0xff]  ;;  %p696_p7 = pnand %p695_p3, %p689_p8 }
  0x61   : > { %518 = vmatprep.subr.bf16.mxu0 %v517_v24  ;;  %550 = vmatpush3.bf16.msra.mxu1 %v515_v23  ;;  %v533_v48 = vpack.c.bf16 %v256_v47, %v255_v46  ;;  %v240_v50 = vld [vmem:[#allocation5 + $0x68] sm:$0xff]  ;;  %v258_v52 = vld [vmem:[#allocation5 + $0xf8] sm:$0xff]  ;;  %v241_v55 = vld [vmem:[#allocation5 + $0x70] sm:$0xff] }
  0x62   : > { %543 = vmatprep.subr.bf16.mxu1 %v517_v24  ;;  %v535_v53 = vpack.c.bf16 %v240_v50, %v239_v49  ;;  %v537_v54 = vpack.c.bf16 %v258_v52, %v257_v51  ;;  %v242_v56 = vld [vmem:[#allocation5 + $0x78] sm:$0xff]  ;;  %v462_v8 = vld [vmem:[%s1014_s2] ss:$0 sm:$0xff] }
  0x63   : > { %v539_v57 = vpack.c.bf16 %v242_v56, %v241_v55 }
  0x64   : > { %520 = vmatpush3.bf16.msra.mxu0 %v519_v29 }
  0x65   : > { %522 = vmatprep.subr.bf16.mxu0 %v521_v30  ;;  %551 = vmatpush3.bf16.msra.mxu1 %v519_v29 }
  0x66   : > { %544 = vmatprep.subr.bf16.mxu1 %v521_v30 }
  0x68   : > { %524 = vmatpush3.bf16.msra.mxu0 %v523_v35 }
  0x69   : > { %526 = vmatprep.subr.bf16.mxu0 %v525_v36  ;;  %552 = vmatpush3.bf16.msra.mxu1 %v523_v35 }
  0x6a   : > { %545 = vmatprep.subr.bf16.mxu1 %v525_v36 }
  0x6c   : > { %528 = vmatpush3.bf16.msra.mxu0 %v527_v39 }
  0x6d   : > { %530 = vmatprep.subr.bf16.mxu0 %v529_v42  ;;  %553 = vmatpush3.bf16.msra.mxu1 %v527_v39 }
  0x6e   : > { %546 = vmatprep.subr.bf16.mxu1 %v529_v42 }
  0x70   : > { %532 = vmatpush3.bf16.msra.mxu0 %v531_v45 }
  0x71   : > { %534 = vmatprep.subr.bf16.mxu0 %v533_v48  ;;  %554 = vmatpush3.bf16.msra.mxu1 %v531_v45 }
  0x72   : > { %547 = vmatprep.subr.bf16.mxu1 %v533_v48 }
  0x74   : > { %536 = vmatpush3.bf16.msra.mxu0 %v535_v53 }
  0x75   : > { %538 = vmatprep.subr.bf16.mxu0 %v537_v54  ;;  %555 = vmatpush3.bf16.msra.mxu1 %v535_v53 }
  0x76   : > { %548 = vmatprep.subr.bf16.mxu1 %v537_v54 }
  0x78   : > { %540 = vmatpush3.bf16.msra.mxu0 %v539_v57 }
  0x79   : > { %556 = vmatpush3.bf16.msra.mxu1 %v539_v57 }
  0xe9   : > { %v217_v58 = vpop.xlane.xlu0 %216 }
  0xea   : > { %620 = vrsqrt.f32 %v217_v58 }
  0xed   : > { %v220_v59 = vpop.xlane.xlu0 %219 }
  0xee   : > { %622 = vrsqrt.f32 %v220_v59 }
  0xf4   : > { %v621_v60 = vpop.eup %620 }
  0xf5   : > { %v224_v61 = vmul.f32 %v621_v60, %v940_v1  ;;  %v223_v62 = vmul.f32 %v621_v60, %v938_v0 }
  0xf7   : > { %330 = vmatprep.mubr.f32.mxu0 %v224_v61 }
  0xf8   : > { %v623_v63 = vpop.eup %622  ;;  %331 = vmatmul.mubr.f32.vlgmr.msra.gmra.mrb[0].mxu0 %v223_v62 }
  0xf9   : > { %v226_v3 = vmul.f32 %v623_v63, %v948_v5  ;;  %v225_v4 = vmul.f32 %v623_v63, %v942_v2 }
  0xfb   : > { %335 = vmatprep.mubr.f32.mxu1 %v226_v3 }
  0xfc   : > { %336 = vmatmul.mubr.f32.vlgmr.msra.gmra.mrb[0].mxu1 %v225_v4 }
 0x1cb   : > { %v503_v6 = vpop.f32.mrb[0].mxu0 }
 0x1cc   : > { %v504_v7 = vpop.f32.mrb[1].mxu0 }
 0x1cd   : > { %v505_v9 = vadd.f32 %v504_v7, %v503_v6 }
 0x1cf   : > { %v506_v1 = vpop.f32.mrb[0].mxu1  ;;  %v333_v0 = vadd.f32 %v505_v9, %v462_v8 }
 0x1d0   : > { %v507_v10 = vpop.f32.mrb[1].mxu1 }
 0x1d1   : > { %v508_v11 = vadd.f32 %v507_v10, %v506_v1  ;;  %v341_v12 = vmul.f32 %v333_v0, %v333_v0 }
 0x1d3   : > { %v338_v13 = vadd.f32 %v508_v11, %v462_v8  ;;  %343 = vadd.xlane.f32.xlu1 %v341_v12 }
 0x1d5   : > { %v342_v5 = vmul.f32 %v338_v13, %v338_v13 }
 0x1d7   : > { %345 = vadd.xlane.f32.xlu1 %v342_v5 }
 0x260   : > { %v344_v2 = vpop.xlane.xlu1 %343 }
 0x261   : > { %624 = vrsqrt.f32 %v344_v2 }
 0x264   : > { %v346_v14 = vpop.xlane.xlu1 %345 }
 0x265   : > { %626 = vrsqrt.f32 %v346_v14 }
 0x26b   : > { %v625_v15 = vpop.eup %624 }
 0x26c   : > { %v349_v16 = vmul.f32 %v625_v15, %v333_v0 }
 0x26e   : > { %351 = vst [vmem:[%s204_s26] sm:$0xff] %v349_v16 }
 0x26f   : > { %v627_v17 = vpop.eup %626 }
 0x270   : > { %v350_v18 = vmul.f32 %v627_v17, %v338_v13 }
 0x272   : > { %352 = vst [vmem:[%s204_s26 + $0x8] sm:$0xff] %v350_v18 }
 0x273   : > { %699 = shalt.err (!%p696_p7)
}
 0x274   : > { %s700_s22 = scalar_lea.hbm %s966_s27, 256  ;;  %s704_s9 = scalar_lea.hbm %s1015_s3, 512 }
 0x275   : > { %p701_p9 = scmp.ne.s32.totalorder %s966_s27, %s700_s22  ;;  %p705_p5 = scmp.lt.u32.totalorder %s966_s27, %s1015_s3 }
 0x276   : > { %p706_p1 = scmp.lt.u32.totalorder %s704_s9, %s700_s22  ;;  %p708_p4 = scmp.lt.u32.totalorder %s700_s22, %s966_s27 }
 0x277   : > { %p702_p2 = pnand %p701_p9, %p878_p12 }
 0x278   : > { %p707_p11 = por %p706_p1, %p705_p5 }
 0x279   : > { %p703_p0 = pneg %p702_p2 }
 0x27a   : > { %p709_p6 = por %p708_p4, %p707_p11 }
 0x27c   : > { %p710_p8 = pnand %p709_p6, %p703_p0 }
 0x27e   : > { %713 = shalt.err (!%p710_p8)
}
 0x27f   : > { %s765_s4 = smov 128   ;;  %s766_s25 = smov 8  }
 0x280   : > { %563 = dma.vmem_to_hbm [thread:$0]  (%p878_p12), %s968_s5, 256, %s966_s27, %s354_s28, %s765_s4, %s765_s4, %s766_s25  }
 0x281 PF: > { %s382_s26 = sand.u32 1, %s744_s12   ;;  %p1030_p10 = scmp.ne.s32.totalorder %s1020_s19, 0 }
 0x282   : > { %p1031_p13 = scmp.ge.s32.totalorder %s756_s15, 2  ;;  %s383_s10 = scalar_lea.sflag [#allocation4], %s382_s26 }
 0x284   : > { %p574_p3 = pnand %p1031_p13, %p1030_p10 }
 0x286   : > { %739 = dma.done.wait (!%p574_p3), %s383_s10, 256  }
 0x287   : > { %741 = vsyncadd (!%p574_p3), %s383_s10, 4294967040  ;;  %p17_p7 = scmp.ge.s32.totalorder %s843_s24, 4   ;;  %s1032_s12 = smov %s748_s13 }
 0x288   : > { %s1033_s13 = smov %s752_s14  ;;  %s1034_s14 = smov %s874_s17 }
 0x289   : > { %s1035_s15 = smov %s843_s24  ;;  %19 = sbr.rel (!%p17_p7) target bundleno = 6 (0x6), region = 81 }
 0x290   :  { %388 = vsyncpa [#allocation3], 1 }
 0x291   :  { %390 = vsyncpa [#allocation3 + $0x1], 1 }
 0x292   :  { %391 = vsyncpa [#allocation6], 1 }
 0x293   :  { %392 = vsyncpa [#allocation4], 1 }
 0x294   :  { %394 = vsyncpa [#allocation4 + $0x1], 1 }

</bundles_post_ra>
